<compile_context>
chip_gen: v6e
topology: v6e:2x2x1
jax: 0.10.0
libtpu: 0.0.40
codegen_flags: <defaults>
</compile_context>

<pallas_src>
import jax
import jax.numpy as jnp
from jax.experimental import pallas as pl
from jax.experimental.pallas import tpu as pltpu


def se_block(x_nchw, params, *, vmem_x_budget_bytes=24 * (1 << 20)):
    """x_nchw: (N, C, H, W); params['w1']:(Cb,C), 'b1':(Cb,), 'w2':(C,Cb), 'b2':(C,)."""
    N, C, H, W = x_nchw.shape
    HW = H * W
    dsize = jnp.dtype(x_nchw.dtype).itemsize
    Cb = params["w1"].shape[0]

    # Lane-dense layout: (N, C, HWp) with HWp a multiple of 128 (zero padded).
    HWp = ((HW + 127) // 128) * 128
    x3 = x_nchw.reshape(N, C, HW)
    if HWp != HW:
        x3 = jnp.pad(x3, ((0, 0), (0, 0), (0, HWp - HW)))

    # Images per grid step: fit 2 in + 2 out pipeline buffers in the VMEM
    # budget, keep several steps for pipelining / megacore, and divide N.
    per_image = C * HWp * dsize
    K = max(1, min(N, vmem_x_budget_bytes // (4 * per_image)))
    if N >= 4:
        K = min(K, max(1, N // 4))
    while N % K != 0:
        K -= 1
    grid = (N // K,)

    # PyTorch (out, in) weights, pre-transposed once -> no in-kernel transposes.
    w1t = params["w1"].T                       # (C, Cb)
    w2t = params["w2"].T                       # (Cb, C)
    b1 = params["b1"].reshape(1, Cb)
    b2 = params["b2"].reshape(1, C)

    inv_hw = 1.0 / float(HW)                   # true spatial size (pad lanes are 0)

    def kernel(x_ref, w1t_ref, b1_ref, w2t_ref, b2_ref, o_ref):
        # Squeeze: f32-accumulated mean over the spatial (lane) axis.
        pooled = jnp.sum(x_ref[...], axis=-1, dtype=jnp.float32) * inv_hw   # (K, C)
        # Excitation: Linear -> ReLU -> Linear -> Sigmoid (tiny MXU matmuls).
        h = jnp.dot(pooled, w1t_ref[...],
                    preferred_element_type=jnp.float32) + b1_ref[...]       # (K, Cb)
        h = jnp.maximum(h, 0.0)
        z = jnp.dot(h, w2t_ref[...],
                    preferred_element_type=jnp.float32) + b2_ref[...]       # (K, C)
        gate = jax.nn.sigmoid(z)                                            # (K, C)
        # Scale: per-(image, channel) gate broadcast over spatial lanes,
        # on the native-dtype tile (no full-tile upcast).
        o_ref[...] = x_ref[...] * gate[:, :, None].astype(o_ref.dtype)

    # VMEM: 2 in + 2 out x-tile buffers dominate; weights are a few KiB.
    vmem_need = 4 * K * per_image + 8 * (C * Cb + C + Cb) * 4 + (1 << 20)
    vmem_limit = int(min(max(vmem_need, 16 * (1 << 20)), 48 * (1 << 20)))

    cost = pl.CostEstimate(
        flops=int(N * (C * HW + 4 * C * Cb + C)),
        transcendentals=int(N * C),
        bytes_accessed=int(2 * N * C * HW * dsize),
    )

    out3 = pl.pallas_call(
        kernel,
        out_shape=jax.ShapeDtypeStruct((N, C, HWp), x_nchw.dtype),
        grid_spec=pltpu.PrefetchScalarGridSpec(
            num_scalar_prefetch=0,
            grid=grid,                                            # K images per step
            in_specs=[
                pl.BlockSpec((K, C, HWp), lambda n: (n, 0, 0)),   # x tile
                pl.BlockSpec((C, Cb), lambda n: (0, 0)),          # W1^T
                pl.BlockSpec((1, Cb), lambda n: (0, 0)),          # b1
                pl.BlockSpec((Cb, C), lambda n: (0, 0)),          # W2^T
                pl.BlockSpec((1, C), lambda n: (0, 0)),           # b2
            ],
            out_specs=pl.BlockSpec((K, C, HWp), lambda n: (n, 0, 0)),
        ),
        compiler_params=pltpu.CompilerParams(
            dimension_semantics=("parallel",),                    # megacore on v7x
            vmem_limit_bytes=vmem_limit,
        ),
        cost_estimate=cost,
    )(x3, w1t, b1, w2t, b2)

    if HWp != HW:
        out3 = out3[:, :, :HW]
    return out3.reshape(N, C, H, W)


def se_block_reference(x, p):
    """Pure-JAX reference with PyTorch Linear semantics (W: (out, in))."""
    pooled = x.mean(axis=(2, 3))                              # (N, C)
    h = jax.nn.relu(pooled @ p["w1"].T + p["b1"])             # (N, Cb)
    g = jax.nn.sigmoid(h @ p["w2"].T + p["b2"])               # (N, C)
    return x * g[:, :, None, None]


def init_params(key, c, reduction):
    cb = c // reduction
    k1, k2, k3, k4 = jax.random.split(key, 4)
    s1 = 1.0 / jnp.sqrt(jnp.float32(c))
    s2 = 1.0 / jnp.sqrt(jnp.float32(cb))
    return {
        "w1": s1 * jax.random.normal(k1, (cb, c), jnp.float32),
        "b1": s1 * jax.random.normal(k2, (cb,), jnp.float32),
        "w2": s2 * jax.random.normal(k3, (c, cb), jnp.float32),
        "b2": s2 * jax.random.normal(k4, (c,), jnp.float32),
    }


if __name__ == "__main__":
    N, C, H, W = 8, 32, 16, 16       # in_feature = 32
    REDUCTION = 4                    # bottleneck = 8

    key = jax.random.PRNGKey(0)
    kx, kp = jax.random.split(key)
    x = jax.random.normal(kx, (N, C, H, W), jnp.float32)   # NCHW, like PyTorch
    params = init_params(kp, C, REDUCTION)

    out = jax.block_until_ready(se_block(x, params))
    ref = jax.block_until_ready(se_block_reference(x, params))

    assert out.shape == (N, C, H, W), out.shape
    assert jnp.allclose(out, ref, rtol=1e-3, atol=1e-3), \
        f"max abs err = {jnp.max(jnp.abs(out - ref))}"
    print("KERNEL_OK")
</pallas_src>

<mosaic_0001>
module attributes {stable_mosaic.version = 11 : i64} {
  func.func @kernel(%arg0: i32, %arg1: memref<2x32x256xf32, #tpu.memory_space<vmem>>, %arg2: memref<32x8xf32, #tpu.memory_space<vmem>>, %arg3: memref<1x8xf32, #tpu.memory_space<vmem>>, %arg4: memref<8x32xf32, #tpu.memory_space<vmem>>, %arg5: memref<1x32xf32, #tpu.memory_space<vmem>>, %arg6: memref<2x32x256xf32, #tpu.memory_space<vmem>>) attributes {dimension_semantics = [#tpu.dimension_semantics<parallel>], iteration_bounds = array<i64: 4>, scalar_prefetch = 0 : i64, scratch_operands = 0 : i64, tpu.core_type = #tpu.core_type<tc>, window_params = [{transform_indices = @transform_0, window_bounds = array<i64: 2, 32, 256>}, {pipeline_mode = #tpu.pipeline_mode<synchronous>, transform_indices = @transform_1, window_bounds = array<i64: 32, 8>}, {pipeline_mode = #tpu.pipeline_mode<synchronous>, transform_indices = @transform_2, window_bounds = array<i64: 1, 8>}, {pipeline_mode = #tpu.pipeline_mode<synchronous>, transform_indices = @transform_3, window_bounds = array<i64: 8, 32>}, {pipeline_mode = #tpu.pipeline_mode<synchronous>, transform_indices = @transform_4, window_bounds = array<i64: 1, 32>}, {transform_indices = @transform_5, window_bounds = array<i64: 2, 32, 256>}]} {
    %c0 = arith.constant 0 : index
    %c0_0 = arith.constant 0 : index
    %c0_1 = arith.constant 0 : index
    %0 = vector.load %arg1[%c0, %c0_0, %c0_1] : memref<2x32x256xf32, #tpu.memory_space<vmem>>, vector<2x32x256xf32>
    %cst = arith.constant dense<0.000000e+00> : vector<2x32xf32>
    %1 = vector.multi_reduction <add>, %0, %cst [2] : vector<2x32x256xf32> to vector<2x32xf32>
    %cst_2 = arith.constant 3.906250e-03 : f32
    %2 = vector.broadcast %cst_2 : f32 to vector<2x32xf32>
    %3 = arith.mulf %1, %2 : vector<2x32xf32>
    %c0_3 = arith.constant 0 : index
    %c0_4 = arith.constant 0 : index
    %4 = vector.load %arg2[%c0_3, %c0_4] : memref<32x8xf32, #tpu.memory_space<vmem>>, vector<32x8xf32>
    %cst_5 = arith.constant dense<0.000000e+00> : vector<2x8xf32>
    %5 = tpu.matmul %3, %4, %cst_5 {dimension_numbers = #tpu.dot_dimension_numbers<[1], [0], [0], [1], [0, 0, 1, 1], [], []>} : vector<2x32xf32>, vector<32x8xf32>, vector<2x8xf32> -> vector<2x8xf32>
    %c0_6 = arith.constant 0 : index
    %c0_7 = arith.constant 0 : index
    %6 = vector.load %arg3[%c0_6, %c0_7] : memref<1x8xf32, #tpu.memory_space<vmem>>, vector<1x8xf32>
    %7 = vector.broadcast %6 : vector<1x8xf32> to vector<2x8xf32>
    %8 = arith.addf %5, %7 : vector<2x8xf32>
    %cst_8 = arith.constant 0.000000e+00 : f32
    %9 = vector.broadcast %cst_8 : f32 to vector<2x8xf32>
    %10 = arith.maximumf %8, %9 : vector<2x8xf32>
    %c0_9 = arith.constant 0 : index
    %c0_10 = arith.constant 0 : index
    %11 = vector.load %arg4[%c0_9, %c0_10] : memref<8x32xf32, #tpu.memory_space<vmem>>, vector<8x32xf32>
    %cst_11 = arith.constant dense<0.000000e+00> : vector<2x32xf32>
    %12 = tpu.matmul %10, %11, %cst_11 {dimension_numbers = #tpu.dot_dimension_numbers<[1], [0], [0], [1], [0, 0, 1, 1], [], []>} : vector<2x8xf32>, vector<8x32xf32>, vector<2x32xf32> -> vector<2x32xf32>
    %c0_12 = arith.constant 0 : index
    %c0_13 = arith.constant 0 : index
    %13 = vector.load %arg5[%c0_12, %c0_13] : memref<1x32xf32, #tpu.memory_space<vmem>>, vector<1x32xf32>
    %14 = vector.broadcast %13 : vector<1x32xf32> to vector<2x32xf32>
    %15 = arith.addf %12, %14 : vector<2x32xf32>
    %16 = arith.negf %15 : vector<2x32xf32>
    %17 = math.exp %16 : vector<2x32xf32>
    %cst_14 = arith.constant 1.000000e+00 : f32
    %18 = vector.broadcast %cst_14 : f32 to vector<2x32xf32>
    %19 = arith.addf %18, %17 : vector<2x32xf32>
    %20 = arith.divf %18, %19 : vector<2x32xf32>
    %c0_15 = arith.constant 0 : index
    %c0_16 = arith.constant 0 : index
    %c0_17 = arith.constant 0 : index
    %21 = vector.load %arg1[%c0_15, %c0_16, %c0_17] : memref<2x32x256xf32, #tpu.memory_space<vmem>>, vector<2x32x256xf32>
    %22 = vector.shape_cast %20 : vector<2x32xf32> to vector<2x32x1xf32>
    %23 = vector.broadcast %22 : vector<2x32x1xf32> to vector<2x32x256xf32>
    %24 = arith.mulf %21, %23 : vector<2x32x256xf32>
    %c0_18 = arith.constant 0 : index
    %c0_19 = arith.constant 0 : index
    %c0_20 = arith.constant 0 : index
    %25 = vector.load %arg6[%c0_18, %c0_19, %c0_20] : memref<2x32x256xf32, #tpu.memory_space<vmem>>, vector<2x32x256xf32>
    tpu.vector_store %arg6[%c0_18, %c0_19, %c0_20], %24 {strides = array<i32>} : memref<2x32x256xf32, #tpu.memory_space<vmem>>, vector<2x32x256xf32>,
    return
  }
  func.func @transform_0(%arg0: i32) -> (i32, i32, i32) {
    %c0_i32 = arith.constant 0 : i32
    %c0_i32_0 = arith.constant 0 : i32
    %c0_i32_1 = arith.constant 0 : i32
    return %arg0, %c0_i32, %c0_i32_0 : i32, i32, i32
  }
  func.func @transform_1(%arg0: i32) -> (i32, i32) {
    %c0_i32 = arith.constant 0 : i32
    %c0_i32_0 = arith.constant 0 : i32
    %c0_i32_1 = arith.constant 0 : i32
    return %c0_i32, %c0_i32_0 : i32, i32
  }
  func.func @transform_2(%arg0: i32) -> (i32, i32) {
    %c0_i32 = arith.constant 0 : i32
    %c0_i32_0 = arith.constant 0 : i32
    %c0_i32_1 = arith.constant 0 : i32
    return %c0_i32, %c0_i32_0 : i32, i32
  }
  func.func @transform_3(%arg0: i32) -> (i32, i32) {
    %c0_i32 = arith.constant 0 : i32
    %c0_i32_0 = arith.constant 0 : i32
    %c0_i32_1 = arith.constant 0 : i32
    return %c0_i32, %c0_i32_0 : i32, i32
  }
  func.func @transform_4(%arg0: i32) -> (i32, i32) {
    %c0_i32 = arith.constant 0 : i32
    %c0_i32_0 = arith.constant 0 : i32
    %c0_i32_1 = arith.constant 0 : i32
    return %c0_i32, %c0_i32_0 : i32, i32
  }
  func.func @transform_5(%arg0: i32) -> (i32, i32, i32) {
    %c0_i32 = arith.constant 0 : i32
    %c0_i32_0 = arith.constant 0 : i32
    %c0_i32_1 = arith.constant 0 : i32
    return %arg0, %c0_i32, %c0_i32_0 : i32, i32, i32
  }
}

</mosaic_0001>

<bundles_post_ra>
// kernel: tpu_custom_call.1
= control target key start
LH: loop header
LB: loop body
LE: loop exit
PB: predicated region body
PF: predicated region fallthrough
CT: control target
= control target key end

     0   :  { %10 = vsyncpa [#allocation3], 0  ;;  %s1185_s0 = inlined_call_operand.hbm [shape: f32[8,32,256], index: 0, kind: input, shape index: {}]   ;;  %s1186_s1 = inlined_call_operand.vmem [shape: f32[32,8], index: 1, kind: input, shape index: {}]   ;;  %s1187_s2 = inlined_call_operand.vmem [shape: f32[1,8], index: 2, kind: input, shape index: {}]   ;;  %s1188_s3 = inlined_call_operand.vmem [shape: f32[8,32], index: 3, kind: input, shape index: {}]   ;;  %s1189_s4 = inlined_call_operand.vmem [shape: f32[1,32], index: 4, kind: input, shape index: {}]   ;;  %s1190_s5 = inlined_call_operand.hbm [shape: f32[8,32,256], index: 5, kind: output, shape index: {}]  }
   0x1   :  { %12 = vsyncpa [#allocation3 + $0x1], 0 }
   0x2   :  { %13 = vsyncpa [#allocation4], 0 }
   0x3   :  { %15 = vsyncpa [#allocation4 + $0x1], 0  ;;  %s917_s18 = smov 0   ;;  %s919_s19 = smov 0  }
   0x4   :  { %s921_s20 = smov 0   ;;  %s923_s21 = smov 0  }
   0x5 LB: > { %s938_s22 = sadd.s32 4294967295, %s877_s21   ;;  %s681_s23 = sadd.s32 4294967294, %s877_s21   ;;  %s877_s21 = sphi %s923_s21, %s1204_s21   ;;  %s873_s20 = sphi %s921_s20, %s1203_s20   ;;  %s869_s19 = sphi %s919_s19, %s1202_s19   ;;  %s865_s18 = sphi %s917_s18, %s1201_s18  }
   0x6   : > { %s942_s24 = sadd.s32 1, %s877_s21   ;;  %s28_s25 = sadd.s32 1, %s873_s20 }
   0x7   : > { %s25_s26 = ssub.s32 %s877_s21, %s942_s24  ;;  %p35_p0 = scmp.ne.s32.totalorder %s873_s20, %s869_s19 }
   0x8   : > { %p26_p1 = scmp.eq.s32.totalorder %s25_s26, 0  ;;  %p36_p2 = scmp.eq.s32.totalorder %s877_s21, 0 }
   0x9   : > { %p41_p3 = scmp.ne.s32.totalorder %s869_s19, %s865_s18  ;;  %p42_p4 = scmp.eq.s32.totalorder %s938_s22, 0 }
   0xa   : > { %s954_s27 = scalar_select %p26_p1, %s873_s20, %s28_s25  }
   0xb   : > { %p956_p5 = por %p36_p2, %p35_p0  ;;  %p960_p6 = por %p42_p4, %p41_p3 }
   0xc   : > { %p149_p7 = scmp.eq.s32.totalorder %s938_s22, 3  ;;  %p155_p8 = scmp.eq.s32.totalorder %s681_s23, 3 }
   0xd   : > { %s1194_s29 = scalar_select %p960_p6, 1, 0 }
   0xe   : > { %p741_p9 = scmp.lt.s32.totalorder %s877_s21, 4  ;;  %p966_p10 = por %p149_p7, %p35_p0 }
   0xf   : > { %p970_p11 = por %p155_p8, %p41_p3  ;;  %s187_s7 = sand.u32 1, %s873_s20  }
  0x10   : > { %s1195_s30 = scalar_select %p966_p10, 1, 0 }
  0x11   : > { %s1196_s6 = scalar_select %p970_p11, 1, 0 }
  0x12   : > { %s703_s8 = sshll.u32 %s877_s21, 11  ;;  %s684_s9 = sshll.u32 %s187_s7, 7 }
  0x13   : > { %s979_s12 = scalar_lea.hbm %s1185_s0, %s703_s8  ;;  %s191_s13 = scalar_lea.vmem [#allocation2], %s684_s9 }
  0x14   : > { %s199_s14 = sshll.u32 %s191_s13, 4  ;;  %p983_p12 = pnand %p741_p9, %p956_p5  ;;  %s987_s14 = int_to_ptr.vmem [resolvable:$true] %s199_s14 }
  0x15   : > { %s989_s16 = scalar_lea.sflag [#allocation3], %s187_s7  ;;  %s785_s17 = scalar_lea.hbm %s979_s12, 2048 }
  0x16   : > { %p786_p13 = scmp.ne.s32.totalorder %s979_s12, %s785_s17  ;;  %p787_p0 = pneg %p983_p12 }
  0x17   : > { %s790_s26 = scalar_lea.hbm %s1185_s0, 8192  ;;  %p791_p3 = scmp.lt.s32.totalorder %s979_s12, %s1185_s0 }
  0x18   : > { %p788_p1 = pnand %p787_p0, %p786_p13  ;;  %p792_p4 = scmp.lt.s32.totalorder %s790_s26, %s785_s17 }
  0x1a   : > { %p789_p2 = pneg %p788_p1  ;;  %p793_p5 = por %p792_p4, %p791_p3 }
  0x1c   : > { %p794_p7 = pnand %p793_p5, %p789_p2 }
  0x1e   : > { %797 = shalt.err (!%p794_p7)
}
  0x1f   : > { %s798_s7 = scalar_lea.vmem %s987_s14, 2048  ;;  %s879_s9 = smov [#allocation2]  }
  0x20   : > { %p799_p8 = scmp.ne.s32.totalorder %s987_s14, %s798_s7  ;;  %s803_s10 = sshll.u32 %s879_s9, 4  ;;  %s804_s10 = int_to_ptr.vmem [resolvable:$false] %s803_s10 }
  0x21   : > { %s805_s11 = scalar_lea.vmem %s804_s10, 4096  ;;  %p806_p1 = scmp.lt.s32.totalorder %s987_s14, %s804_s10 }
  0x22   : > { %p801_p9 = pnand %p799_p8, %p787_p0  ;;  %p807_p11 = scmp.lt.s32.totalorder %s805_s11, %s798_s7 }
  0x24   : > { %p802_p13 = pneg %p801_p9  ;;  %p808_p10 = por %p807_p11, %p806_p1 }
  0x26   : > { %p809_p6 = pnand %p808_p10, %p802_p13 }
  0x28   : > { %812 = shalt.err (!%p809_p6)
}
  0x29   : > { %s880_s13 = smov 256   ;;  %s881_s17 = smov 16  }
  0x2a   : > { %736 = dma.hbm_to_vmem [thread:$0]  (!%p983_p12), %s979_s12, 2048, %s987_s14, %s989_s16, %s880_s13, %s880_s13, %s881_s17  }
  0x2b   : > { %p688_p0 = scmp.ge.s32.totalorder %s877_s21, 1  ;;  %p207_p2 = scmp.lt.s32.totalorder %s877_s21, 5 }
  0x2d   : > { %p208_p3 = pnand %p688_p0, %p207_p2 }
  0x2e   : > { %s1013_s23 = sand.u32 (!%p208_p3), 1, %s869_s19   ;;  %p1198_p6 = scmp.ne.s32.totalorder (!%p208_p3), %s1194_s29, 0 }
  0x2f   : > { %211 = sbr.rel (%p208_p3) target bundleno = 786 (0x312), region = 40  ;;  %s689_s25 = sshll.u32 (!%p208_p3), %s1013_s23, 7 }
  0x30   : > { %s214_s26 = scalar_lea.sflag (!%p208_p3), [#allocation3], %s1013_s23  ;;  %s217_s28 = scalar_lea.vmem (!%p208_p3), [#allocation2], %s689_s25 }
  0x34   : > { %856 = dma.done.wait (%p1198_p6), %s214_s26, 2048  }
  0x35   : > { %858 = vsyncadd (%p1198_p6), %s214_s26, 4294965248  ;;  %v1023_v0 = vld [vmem:[%s217_s28 + $0x40] sm:$0xff]  ;;  %v1025_v1 = vld [vmem:[%s217_s28 + $0x48] sm:$0xff]  ;;  %v882_v24 = vmov 0.0   ;;  %vm883_vm0 = vmmov 0   ;;  %v313_v29 = vlaneseq  ;;  %vm324_vm1 = vcmask 130112  }
  0x36   : > { %v1027_v2 = vld [vmem:[%s217_s28] sm:$0xff]  ;;  %v274_v3 = vadd.f32 %v1025_v1, %v1023_v0  ;;  %v1031_v4 = vld [vmem:[%s217_s28 + $0x8] sm:$0xff]  ;;  %v1033_v5 = vld [vmem:[%s217_s28 + $0x50] sm:$0xff]  ;;  %713 = vmatprep.subr.mxu0 %v882_v24  ;;  %724 = vmatprep.subr.mxu1 %v882_v24  ;;  %vm331_vm2 = vcmask 195712   ;;  %vm338_vm3 = vcmask 261312   ;;  %vm359_vm4 = vcmask 1041409  }
  0x37   : > { %v1035_v6 = vld [vmem:[%s217_s28 + $0x58] sm:$0xff]  ;;  %v262_v7 = vadd.f32 %v1031_v4, %v1027_v2  ;;  %v1039_v8 = vld [vmem:[%s217_s28 + $0x10] sm:$0xff]  ;;  %v1047_v12 = vld [vmem:[%s217_s28 + $0x60] sm:$0xff]  ;;  %721 = vmatprep.mubr.msk.f32.mxu0 %vm883_vm0, %v882_v24  ;;  %726 = vmatprep.mubr.msk.f32.mxu1 %vm883_vm0, %v882_v24  ;;  %v314_v31 = vand.u32 127, %v313_v29  ;;  %v1083_v36 = vshrl.u32 %v313_v29, 7  ;;  %vm361_vm5 = vcmask 261120  }
  0x38   : > { %v1041_v9 = vld [vmem:[%s217_s28 + $0x18] sm:$0xff]  ;;  %275 = vadd.xlane.f32.xlu1 %v274_v3  ;;  %v277_v10 = vadd.f32 %v1035_v6, %v1033_v5  ;;  %v1049_v13 = vld [vmem:[%s217_s28 + $0x68] sm:$0xff]  ;;  %v1051_v14 = vld [vmem:[%s217_s28 + $0x20] sm:$0xff]  ;;  %vm443_vm6 = vcmask 64512   ;;  %s1106_s29 = scalar_lea.vmem [#allocation5], %s689_s25  ;;  %s705_s25 = sshll.u32 %s938_s22, 11 }
  0x39   : > { %263 = vadd.xlane.f32.xlu0 %v262_v7  ;;  %v265_v11 = vadd.f32 %v1041_v9, %v1039_v8  ;;  %v1053_v15 = vld [vmem:[%s217_s28 + $0x28] sm:$0xff]  ;;  %v280_v16 = vadd.f32 %v1049_v13, %v1047_v12  ;;  %v1059_v18 = vld [vmem:[%s217_s28 + $0x70] sm:$0xff]  ;;  %v1061_v19 = vld [vmem:[%s217_s28 + $0x78] sm:$0xff]  ;;  %v319_v33 = vadd.s32 4294967288, %v314_v31  ;;  %v326_v35 = vadd.s32 4294967280, %v314_v31  ;;  %s608_s12 = sshll.u32 %s1106_s29, 4  ;;  %s1137_s16 = scalar_lea.hbm %s1190_s5, %s705_s25  ;;  %s1139_s12 = int_to_ptr.vmem [resolvable:$true] %s608_s12 }
  0x3a   : > { %v268_v17 = vadd.f32 %v1053_v15, %v1051_v14  ;;  %v1063_v20 = vld [vmem:[%s217_s28 + $0x30] sm:$0xff]  ;;  %v1065_v21 = vld [vmem:[%s217_s28 + $0x38] sm:$0xff]  ;;  %v283_v22 = vadd.f32 %v1061_v19, %v1059_v18  ;;  %v295_v27 = vld [vmem:[%s1186_s1 + $0x8] sm:$0xff]  ;;  %v333_v40 = vadd.s32 4294967272, %v314_v31  ;;  %v317_v44 = vsub.s32 %v314_v31, %v1083_v36  ;;  %s594_s22 = scalar_lea.sflag [#allocation4], %s1013_s23  ;;  %s813_s8 = scalar_lea.vmem %s1139_s12, 2048 }
  0x3b   : > { %v271_v23 = vadd.f32 %v1065_v21, %v1063_v20  ;;  %v297_v25 = vld [vmem:[%s1186_s1 + $0x18] sm:$0xff]  ;;  %v296_v26 = vld [vmem:[%s1186_s1 + $0x10] sm:$0xff]  ;;  %v294_v28 = vld [vmem:[%s1186_s1] sm:$0xff]  ;;  %v322_v38 = vsub.s32 %v319_v33, %v1083_v36  ;;  %v329_v42 = vsub.s32 %v326_v35, %v1083_v36  ;;  %v525_v35 = vsub.s32 0, %v1083_v36  ;;  %p814_p10 = scmp.ne.s32.totalorder %s1139_s12, %s813_s8  ;;  %p1199_p11 = scmp.ne.s32.totalorder %s1195_s30, 0 }
  0x3c   : > { %278 = vadd.xlane.f32.xlu1 %v277_v10  ;;  %714 = vmatpush3.msra.mxu0 %v297_v25  ;;  %v336_v51 = vsub.s32 %v333_v40, %v1083_v36  ;;  %s884_s7 = smov [#allocation5]  }
  0x3d   : > { %266 = vadd.xlane.f32.xlu0 %v265_v11  ;;  %715 = vmatprep.subr.mxu0 %v882_v24  ;;  %p815_p12 = pnand %p814_p10, %p1199_p11  ;;  %s817_s9 = sshll.u32 %s884_s7, 4  ;;  %s818_s9 = int_to_ptr.vmem [resolvable:$false] %s817_s9 }
  0x3e   : > { %716 = vmatpush3.msra.mxu0 %v296_v26  ;;  %s819_s10 = scalar_lea.vmem %s818_s9, 4096  ;;  %p820_p5 = scmp.lt.s32.totalorder %s1139_s12, %s818_s9 }
  0x3f   : > { %717 = vmatprep.subr.mxu0 %v882_v24  ;;  %p816_p4 = pneg %p815_p12  ;;  %p821_p7 = scmp.lt.s32.totalorder %s819_s10, %s813_s8 }
  0x40   : > { %281 = vadd.xlane.f32.xlu1 %v280_v16  ;;  %718 = vmatpush3.msra.mxu0 %v295_v27 }
  0x41   : > { %269 = vadd.xlane.f32.xlu0 %v268_v17  ;;  %719 = vmatprep.subr.mxu0 %v882_v24  ;;  %p822_p8 = por %p821_p7, %p820_p5 }
  0x42   : > { %720 = vmatpush3.msra.mxu0 %v294_v28  ;;  %v693_v28 = vld [vmem:[%s1189_s4] ss:$0 sm:$0xff] }
  0x43   : > { %p823_p9 = pnand %p822_p8, %p816_p4 }
  0x44   : > { %284 = vadd.xlane.f32.xlu1 %v283_v22  ;;  %v435_v22 = vld [vmem:[%s1188_s3] sm:$0xff] }
  0x45   : > { %272 = vadd.xlane.f32.xlu0 %v271_v23  ;;  %725 = vmatpush3.msra.mxu1 %v435_v22  ;;  %v691_v23 = vld [vmem:[%s1187_s2] ss:$0 sm:$0xff] }
  0xc1   : > { %v276_v30 = vpop.xlane.xlu1 %275 }
  0xc2   : > { %v264_v32 = vpop.xlane.xlu0 %263  ;;  %v290_v45 = vmul.f32 0.00390625, %v276_v30 }
  0xc3   : > { %v286_v48 = vmul.f32 0.00390625, %v264_v32 }
  0xc4   : > { %v343_v55 = vrot.slane %v290_v45, %v317_v44 }
  0xc5   : > { %v279_v34 = vpop.xlane.xlu1 %278  ;;  %v318_v59 = vrot.slane %v286_v48, %v317_v44 }
  0xc6   : > { %v267_v37 = vpop.xlane.xlu0 %266  ;;  %v291_v39 = vmul.f32 0.00390625, %v279_v34 }
  0xc7   : > { %v287_v41 = vmul.f32 0.00390625, %v267_v37 }
  0xc8   : > { %v347_v50 = vrot.slane %v291_v39, %v322_v38  ;;  %v544_v39 = vsub.s32 1, %v1083_v36 }
  0xc9   : > { %v282_v43 = vpop.xlane.xlu1 %281  ;;  %v323_v52 = vrot.slane %v287_v41, %v322_v38 }
  0xca   : > { %v292_v46 = vmul.f32 0.00390625, %v282_v43  ;;  %v270_v47 = vpop.xlane.xlu0 %269  ;;  %v348_v61 = vsel %vm324_vm1, %v347_v50, %v343_v55 }
  0xcb   : > { %v288_v49 = vmul.f32 0.00390625, %v270_v47  ;;  %v325_v63 = vsel %vm324_vm1, %v323_v52, %v318_v59 }
  0xcc   : > { %v352_v53 = vrot.slane %v292_v46, %v329_v42 }
  0xcd   : > { %v285_v54 = vpop.xlane.xlu1 %284  ;;  %v330_v56 = vrot.slane %v288_v49, %v329_v42 }
  0xce   : > { %v293_v57 = vmul.f32 0.00390625, %v285_v54  ;;  %v273_v58 = vpop.xlane.xlu0 %272  ;;  %v353_v3 = vsel %vm331_vm2, %v352_v53, %v348_v61 }
  0xcf   : > { %v289_v60 = vmul.f32 0.00390625, %v273_v58  ;;  %v332_v10 = vsel %vm331_vm2, %v330_v56, %v325_v63 }
  0xd0   : > { %v357_v62 = vrot.slane %v293_v57, %v336_v51 }
  0xd1   : > { %v337_v7 = vrot.slane %v289_v60, %v336_v51 }
  0xd2   : > { %v358_v11 = vsel %vm338_vm3, %v357_v62, %v353_v3 }
  0xd3   : > { %v339_v16 = vsel %vm338_vm3, %v337_v7, %v332_v10 }
  0xd4   : > { %v360_v17 = vsel %vm359_vm4, %v358_v11, %v339_v16 }
  0xd5   : > { %722 = vmatmul.mubr.msk.f32.vlgmr.msra.gmra.mxu0 %vm361_vm5, %v360_v17 }
 0x195   : > { %v430_v24 = vpop.f32.mrf.mxu0 }
 0x196   : > { %v431_v25 = vadd.f32 %v691_v23, %v430_v24 }
 0x197   : > { %v723_v26 = vpop.f32.mrf.mxu0 }
 0x198   : > { %v434_v27 = vmax.f32 %v431_v25, 0.0 }
 0x19a   : > { %727 = vmatmul.mubr.msk.f32.vlgmr.msra.gmra.mxu1 %vm443_vm6, %v434_v27 }
 0x25a   : > { %v513_v29 = vpop.f32.mrf.mxu1 }
 0x25b   : > { %v514_v30 = vadd.f32 %v693_v28, %v513_v29 }
 0x25c   : > { %v728_v31 = vpop.f32.mrf.mxu1 }
 0x25d   : > { %v695_v32 = vmul.f32 -1.442695, %v514_v30 }
 0x25f   : > { %781 = vpow2.f32 %v695_v32 }
 0x26c   : > { %v782_v33 = vpop.eup %781 }
 0x26d   : > { %v520_v34 = vadd.f32 1.0, %v782_v33 }
 0x26f   : > { %783 = vrcp.f32 %v520_v34 }
 0x27c   : > { %v784_v37 = vpop.eup %783 }
 0x27d   : > { %v526_v38 = vrot.slane %v784_v37, %v525_v35  ;;  %v545_v40 = vrot.slane %v784_v37, %v544_v39 }
 0x27f   : > { %532 = vbcast.lane.b32.xlu1 %v526_v38, 264  ;;  %528 = vbcast.lane.b32.xlu0 %v526_v38, 256 }
 0x283   : > { %536 = vbcast.lane.b32.xlu1 %v526_v38, 272  ;;  %547 = vbcast.lane.b32.xlu0 %v545_v40, 256 }
 0x287   : > { %540 = vbcast.lane.b32.xlu1 %v526_v38, 280  ;;  %555 = vbcast.lane.b32.xlu0 %v545_v40, 272 }
 0x28b   : > { %551 = vbcast.lane.b32.xlu1 %v545_v40, 264 }
 0x28f   : > { %559 = vbcast.lane.b32.xlu1 %v545_v40, 280 }
 0x2f1   : > { %v533_v41 = vpop.permute.xlu1 %532  ;;  %v529_v42 = vpop.permute.xlu0 %528 }
 0x2f2   : > { %v563_v43 = vmul.f32 %v533_v41, %v1039_v8  ;;  %v564_v44 = vmul.f32 %v533_v41, %v1041_v9  ;;  %v561_v45 = vmul.f32 %v529_v42, %v1027_v2  ;;  %v562_v36 = vmul.f32 %v529_v42, %v1031_v4 }
 0x2f4   : > { %579 = vst [vmem:[%s1106_s29 + $0x10] sm:$0xff] %v563_v43  ;;  %580 = vst [vmem:[%s1106_s29 + $0x18] sm:$0xff] %v564_v44 }
 0x2f5   : > { %577 = vst [vmem:[%s1106_s29] sm:$0xff] %v561_v45  ;;  %578 = vst [vmem:[%s1106_s29 + $0x8] sm:$0xff] %v562_v36  ;;  %v537_v8 = vpop.permute.xlu1 %536  ;;  %v548_v2 = vpop.permute.xlu0 %547 }
 0x2f6   : > { %v565_v4 = vmul.f32 %v537_v8, %v1051_v14  ;;  %v566_v9 = vmul.f32 %v537_v8, %v1053_v15  ;;  %v569_v46 = vmul.f32 %v548_v2, %v1023_v0  ;;  %v570_v47 = vmul.f32 %v548_v2, %v1025_v1 }
 0x2f8   : > { %581 = vst [vmem:[%s1106_s29 + $0x20] sm:$0xff] %v565_v4  ;;  %582 = vst [vmem:[%s1106_s29 + $0x28] sm:$0xff] %v566_v9 }
 0x2f9   : > { %585 = vst [vmem:[%s1106_s29 + $0x40] sm:$0xff] %v569_v46  ;;  %586 = vst [vmem:[%s1106_s29 + $0x48] sm:$0xff] %v570_v47  ;;  %v541_v48 = vpop.permute.xlu1 %540  ;;  %v556_v49 = vpop.permute.xlu0 %555 }
 0x2fa   : > { %v567_v14 = vmul.f32 %v541_v48, %v1063_v20  ;;  %v568_v50 = vmul.f32 %v541_v48, %v1065_v21  ;;  %v573_v15 = vmul.f32 %v556_v49, %v1047_v12  ;;  %v574_v0 = vmul.f32 %v556_v49, %v1049_v13 }
 0x2fc   : > { %583 = vst [vmem:[%s1106_s29 + $0x30] sm:$0xff] %v567_v14  ;;  %584 = vst [vmem:[%s1106_s29 + $0x38] sm:$0xff] %v568_v50 }
 0x2fd   : > { %589 = vst [vmem:[%s1106_s29 + $0x60] sm:$0xff] %v573_v15  ;;  %590 = vst [vmem:[%s1106_s29 + $0x68] sm:$0xff] %v574_v0  ;;  %v552_v1 = vpop.permute.xlu1 %551 }
 0x2fe   : > { %v571_v51 = vmul.f32 %v552_v1, %v1033_v5  ;;  %v572_v52 = vmul.f32 %v552_v1, %v1035_v6 }
 0x300   : > { %587 = vst [vmem:[%s1106_s29 + $0x50] sm:$0xff] %v571_v51  ;;  %588 = vst [vmem:[%s1106_s29 + $0x58] sm:$0xff] %v572_v52 }
 0x301   : > { %v560_v12 = vpop.permute.xlu1 %559 }
 0x302   : > { %v575_v5 = vmul.f32 %v560_v12, %v1059_v18  ;;  %v576_v13 = vmul.f32 %v560_v12, %v1061_v19 }
 0x304   : > { %591 = vst [vmem:[%s1106_s29 + $0x70] sm:$0xff] %v575_v5  ;;  %592 = vst [vmem:[%s1106_s29 + $0x78] sm:$0xff] %v576_v13 }
 0x305   : > { %826 = shalt.err (!%p823_p9)
}
 0x306   : > { %s827_s11 = scalar_lea.hbm %s1137_s16, 2048  ;;  %s831_s26 = scalar_lea.hbm %s1190_s5, 8192 }
 0x307   : > { %p828_p13 = scmp.ne.s32.totalorder %s1137_s16, %s827_s11  ;;  %p832_p2 = scmp.lt.s32.totalorder %s1137_s16, %s1190_s5 }
 0x308   : > { %p833_p3 = scmp.lt.s32.totalorder %s831_s26, %s827_s11 }
 0x309   : > { %p829_p1 = pnand %p828_p13, %p1199_p11 }
 0x30a   : > { %p834_p6 = por %p833_p3, %p832_p2 }
 0x30b   : > { %p830_p0 = pneg %p829_p1 }
 0x30d   : > { %p835_p10 = pnand %p834_p6, %p830_p0 }
 0x30f   : > { %838 = shalt.err (!%p835_p10)
}
 0x310   : > { %s885_s25 = smov 256   ;;  %s886_s14 = smov 16  }
 0x311   : > { %731 = dma.vmem_to_hbm [thread:$0]  (%p1199_p11), %s1139_s12, 2048, %s1137_s16, %s594_s22, %s885_s25, %s885_s25, %s886_s14  }
 0x312 PF: > { %p742_p12 = scmp.ge.s32.totalorder %s877_s21, 2  ;;  %s623_s15 = sand.u32 1, %s865_s18  }
 0x313   : > { %p1200_p4 = scmp.ne.s32.totalorder %s1196_s6, 0  ;;  %s624_s8 = scalar_lea.sflag [#allocation4], %s623_s15 }
 0x315   : > { %p738_p5 = pnand %p742_p12, %p1200_p4 }
 0x317   : > { %p739_p7 = pneg %p738_p5 }
 0x319   : > { %860 = dma.done.wait (%p739_p7), %s624_s8, 2048  }
 0x31a   : > { %862 = vsyncadd (%p739_p7), %s624_s8, 4294965248  ;;  %p18_p8 = scmp.ge.s32.totalorder %s942_s24, 6   ;;  %s1201_s18 = smov %s869_s19 }
 0x31b   : > { %s1202_s19 = smov %s873_s20  ;;  %s1203_s20 = smov %s954_s27 }
 0x31c   : > { %s1204_s21 = smov %s942_s24  ;;  %20 = sbr.rel (!%p18_p8) target bundleno = 5 (0x5), region = 85 }
 0x321   :  { %629 = vsyncpa [#allocation3], 1 }
 0x322   :  { %631 = vsyncpa [#allocation3 + $0x1], 1 }
 0x323   :  { %632 = vsyncpa [#allocation4], 1 }
 0x324   :  { %634 = vsyncpa [#allocation4 + $0x1], 1 }

</bundles_post_ra>
